<compile_context>
chip_gen: v7x
topology: tpu7x:2x2x1
jax: 0.10.0
libtpu: 0.0.40
codegen_flags: <defaults>
</compile_context>

<pallas_src>
import jax
import jax.numpy as jnp
from jax import lax
from jax.experimental import pallas as pl
from jax.experimental.pallas import tpu as pltpu


def _fuse_block_kernel(slab_ref, w_ref, out_ref):
    """Grid = (N, m_tiles).

    slab_ref: (1, L, Kp, TM)  im2col slab (one batch, one spatial tile), K on sublanes.
    w_ref:    (L, Cout, Kp)   BN-scale-folded weights (+ bias column at row K).
    out_ref:  (1, Cout, TM)   NCHW output tile (lane-dense, TM multiple of 128).
    """
    L = w_ref.shape[0]
    total = jnp.zeros(out_ref.shape[1:], jnp.float32)      # (Cout, TM) f32 acc
    for l in range(L):                                      # static layer unroll
        # Conv + BN (scale folded into weights, bias folded into ones-row of slab)
        y = jnp.dot(w_ref[l], slab_ref[0, l],
                    preferred_element_type=jnp.float32)     # (Cout, TM)
        total = total + jnp.where(y > 0, y, 0.2 * y)        # LeakyReLU(0.2) + sum
    out_ref[...] = total[None].astype(out_ref.dtype)


def _pick_m_tile(hw, max_tile):
    """Largest multiple-of-128 tile of the flattened spatial axis that divides
    H*W and stays <= max_tile; falls back to the full extent."""
    if hw <= max_tile:
        return hw
    t = (max_tile // 128) * 128
    while t >= 128:
        if hw % t == 0:
            return t
        t -= 128
    return hw


def fuse_block_forward(decoder_x, rgb_x, depth_x, params, *,
                       use_bf16=True, max_m_tile=4096):
    """Inputs NCHW float32 (bool tensors are dropped, as in the PyTorch module).
    Returns NCHW float32 (N, Cout, H, W)."""
    dilation = params["dilation"]            # python tuple of active dilations
    conv_w = params["conv_w"]                # (L, 3, 3, Cin, Cout)  (HWIO per layer)
    bn_scale = params["bn_scale"]            # (L, Cout)  gamma / sqrt(var + eps)
    bn_bias = params["bn_bias"]              # (L, Cout)  beta - mean * scale

    feats = [t for t in (decoder_x, rgb_x, depth_x)
             if t is not None and t.dtype != jnp.bool_]
    x = jnp.concatenate(feats, axis=1).astype(jnp.float32)          # (N, Cin, H, W)
    N, Cin, H, W = x.shape
    L = len(dilation)
    Cout = conv_w.shape[-1]
    HW = H * W
    K = 9 * Cin
    # Pad contraction dim to a multiple of 128, guaranteeing >=1 spare row for bias.
    Kp = 128 * pl.cdiv(K + 1, 128)

    # ---- im2col slab (N, L, Kp, H*W), built once in XLA, lane-dense last dim ----
    P = int(max(dilation))
    x_pad = jnp.pad(x, ((0, 0), (0, 0), (P, P), (P, P)))             # (N, Cin, Hp, Wp)
    slabs = []
    for d in dilation:
        taps = []
        for kh in range(3):
            for kw in range(3):
                h0 = P + (kh - 1) * d                                 # static offsets
                w0 = P + (kw - 1) * d
                taps.append(lax.slice(x_pad, (0, 0, h0, w0),
                                      (N, Cin, h0 + H, w0 + W)))      # (N, Cin, H, W)
        t = jnp.stack(taps, axis=1)                                   # (N, 9, Cin, H, W)
        slabs.append(t.reshape(N, K, HW))
    slab = jnp.stack(slabs, axis=1)                                   # (N, L, K, HW)
    slab = jnp.pad(slab, ((0, 0), (0, 0), (0, Kp - K), (0, 0)))
    slab = slab.at[:, :, K, :].set(1.0)                               # bias "ones" row

    # ---- weights: (L,3,3,Cin,Cout) -> (L, Cout, Kp); fold BN scale; bias column ----
    w = jnp.transpose(conv_w, (0, 4, 1, 2, 3)).reshape(L, Cout, K)    # (kh,kw,cin) order
    w = w * bn_scale[:, :, None]                                      # eval-mode BN fold
    w = jnp.pad(w, ((0, 0), (0, 0), (0, Kp - K)))
    w = w.at[:, :, K].set(bn_bias)                                    # BN bias column

    mxu_dtype = jnp.bfloat16 if use_bf16 else jnp.float32
    slab = slab.astype(mxu_dtype)
    w = w.astype(mxu_dtype)

    tm = _pick_m_tile(HW, max_m_tile)
    m_tiles = HW // tm

    out = pl.pallas_call(
        _fuse_block_kernel,
        out_shape=jax.ShapeDtypeStruct((N, Cout, HW), jnp.float32),
        grid_spec=pltpu.PrefetchScalarGridSpec(
            num_scalar_prefetch=0,
            grid=(N, m_tiles),
            in_specs=[
                pl.BlockSpec((1, L, Kp, tm), lambda n, m: (n, 0, 0, m)),
                pl.BlockSpec((L, Cout, Kp), lambda n, m: (0, 0, 0)),
            ],
            out_specs=pl.BlockSpec((1, Cout, tm), lambda n, m: (n, 0, m)),
        ),
        compiler_params=pltpu.CompilerParams(
            dimension_semantics=("parallel", "parallel")),
    )(slab, w)

    return out.reshape(N, Cout, H, W)        # already NCHW; reshape is free


def _reference_forward(decoder_x, rgb_x, depth_x, params):
    """Pure-JAX reference (lax.conv_general_dilated) for correctness check."""
    feats = [t for t in (decoder_x, rgb_x, depth_x)
             if t is not None and t.dtype != jnp.bool_]
    x = jnp.concatenate(feats, axis=1)
    x_nhwc = jnp.transpose(x, (0, 2, 3, 1))
    out = None
    for li, d in enumerate(params["dilation"]):
        w = params["conv_w"][li]                            # (3, 3, Cin, Cout) HWIO
        y = lax.conv_general_dilated(
            x_nhwc, w, window_strides=(1, 1), padding=[(d, d), (d, d)],
            rhs_dilation=(d, d),
            dimension_numbers=("NHWC", "HWIO", "NHWC"),
            precision=lax.Precision.HIGHEST)
        y = y * params["bn_scale"][li] + params["bn_bias"][li]
        y = jnp.where(y > 0, y, 0.2 * y)
        out = y if out is None else out + y
    return jnp.transpose(out, (0, 3, 1, 2))


def make_params(key, input_channels, dilation, internal_channels):
    """Deterministic synthetic parameters matching the module's __init__ shapes."""
    cin = sum(input_channels)
    cout = internal_channels
    # conv_layers truncated to [:1] unless internal_channels > 64 (as in PyTorch).
    active_dil = tuple(dilation) if internal_channels > 64 else tuple(dilation[:1])
    L = len(active_dil)

    keys = jax.random.split(key, 5)
    # Conv2d weight: PyTorch (Cout, Cin, 3, 3) -> kernel layout (L, 3, 3, Cin, Cout).
    conv_w = 0.1 * jax.random.normal(keys[0], (L, 3, 3, cin, cout), jnp.float32)
    # BatchNorm2d params + running stats (eval-mode fold).
    gamma = 1.0 + 0.1 * jax.random.normal(keys[1], (L, cout), jnp.float32)
    beta = 0.1 * jax.random.normal(keys[2], (L, cout), jnp.float32)
    running_mean = 0.1 * jax.random.normal(keys[3], (L, cout), jnp.float32)
    running_var = jnp.abs(jax.random.normal(keys[4], (L, cout), jnp.float32)) + 0.5
    eps = 1e-5
    scale = gamma / jnp.sqrt(running_var + eps)
    bias = beta - running_mean * scale
    return {
        "dilation": active_dil,
        "conv_w": conv_w,
        "bn_scale": scale,
        "bn_bias": bias,
    }


if __name__ == "__main__":
    # FuseBlock(input_channels=(4, 4, 4), dilation=(1, 2), internal_channels=96)
    input_channels = (4, 4, 4)
    dilation = (1, 2)
    internal_channels = 96            # > 64 => both dilated conv branches active
    N, H, W = 2, 16, 16               # H*W = 256 -> lane-dense output tiles

    key = jax.random.PRNGKey(0)
    k_dec, k_rgb, k_dep, k_par = jax.random.split(key, 4)
    decoder_x = jax.random.normal(k_dec, (N, input_channels[0], H, W), jnp.float32)
    rgb_x = jax.random.normal(k_rgb, (N, input_channels[1], H, W), jnp.float32)
    depth_x = jax.random.normal(k_dep, (N, input_channels[2], H, W), jnp.float32)

    params = make_params(k_par, input_channels, dilation, internal_channels)

    ref = jax.block_until_ready(
        _reference_forward(decoder_x, rgb_x, depth_x, params))

    # f32 MXU path: tight check against the f32 reference.
    out_f32 = jax.block_until_ready(
        fuse_block_forward(decoder_x, rgb_x, depth_x, params, use_bf16=False))
    assert out_f32.shape == (N, internal_channels, H, W), out_f32.shape
    assert jnp.allclose(out_f32, ref, atol=1e-3, rtol=1e-3), float(
        jnp.max(jnp.abs(out_f32 - ref)))

    # bf16 MXU path (default; fastest on v5e/v6e/v7x): looser tolerance for the
    # bf16 rounding of activations/weights, f32 accumulation.
    out_bf16 = jax.block_until_ready(
        fuse_block_forward(decoder_x, rgb_x, depth_x, params, use_bf16=True))
    assert out_bf16.shape == (N, internal_channels, H, W), out_bf16.shape
    assert jnp.allclose(out_bf16, ref, atol=5e-2, rtol=5e-2), float(
        jnp.max(jnp.abs(out_bf16 - ref)))

    print("KERNEL_OK")
</pallas_src>

<mosaic_0001>
module attributes {stable_mosaic.version = 11 : i64} {
  func.func @_fuse_block_kernel(%arg0: i32, %arg1: i32, %arg2: memref<1x2x128x256xf32, #tpu.memory_space<vmem>>, %arg3: memref<2x96x128xf32, #tpu.memory_space<vmem>>, %arg4: memref<1x96x256xf32, #tpu.memory_space<vmem>>) attributes {dimension_semantics = [#tpu.dimension_semantics<parallel>, #tpu.dimension_semantics<parallel>], iteration_bounds = array<i64: 2, 1>, scalar_prefetch = 0 : i64, scratch_operands = 0 : i64, tpu.core_type = #tpu.core_type<tc>, window_params = [{transform_indices = @transform_0, window_bounds = array<i64: 1, 2, 128, 256>}, {pipeline_mode = #tpu.pipeline_mode<synchronous>, transform_indices = @transform_1, window_bounds = array<i64: 2, 96, 128>}, {transform_indices = @transform_2, window_bounds = array<i64: 1, 96, 256>}]} {
    %cst = arith.constant 0.000000e+00 : f32
    %0 = vector.broadcast %cst : f32 to vector<96x256xf32>
    %c0 = arith.constant 0 : index
    %c0_0 = arith.constant 0 : index
    %c0_1 = arith.constant 0 : index
    %1 = vector.load %arg3[%c0, %c0_0, %c0_1] : memref<2x96x128xf32, #tpu.memory_space<vmem>>, vector<1x96x128xf32>
    %2 = vector.shape_cast %1 : vector<1x96x128xf32> to vector<96x128xf32>
    %c0_2 = arith.constant 0 : index
    %c0_3 = arith.constant 0 : index
    %c0_4 = arith.constant 0 : index
    %c0_5 = arith.constant 0 : index
    %3 = vector.load %arg2[%c0_2, %c0_3, %c0_4, %c0_5] : memref<1x2x128x256xf32, #tpu.memory_space<vmem>>, vector<1x1x128x256xf32>
    %4 = vector.shape_cast %3 : vector<1x1x128x256xf32> to vector<128x256xf32>
    %cst_6 = arith.constant dense<0.000000e+00> : vector<96x256xf32>
    %5 = tpu.matmul %2, %4, %cst_6 {dimension_numbers = #tpu.dot_dimension_numbers<[1], [0], [0], [1], [0, 0, 1, 1], [], []>} : vector<96x128xf32>, vector<128x256xf32>, vector<96x256xf32> -> vector<96x256xf32>
    %cst_7 = arith.constant 0.000000e+00 : f32
    %6 = vector.broadcast %cst_7 : f32 to vector<96x256xf32>
    %7 = arith.cmpf ogt, %5, %6 : vector<96x256xf32>
    %cst_8 = arith.constant 2.000000e-01 : f32
    %8 = vector.broadcast %cst_8 : f32 to vector<96x256xf32>
    %9 = arith.mulf %8, %5 : vector<96x256xf32>
    %10 = arith.select %7, %5, %9 : vector<96x256xi1>, vector<96x256xf32>
    %11 = arith.addf %0, %10 : vector<96x256xf32>
    %c1 = arith.constant 1 : index
    %c0_9 = arith.constant 0 : index
    %c0_10 = arith.constant 0 : index
    %12 = vector.load %arg3[%c1, %c0_9, %c0_10] : memref<2x96x128xf32, #tpu.memory_space<vmem>>, vector<1x96x128xf32>
    %13 = vector.shape_cast %12 : vector<1x96x128xf32> to vector<96x128xf32>
    %c0_11 = arith.constant 0 : index
    %c1_12 = arith.constant 1 : index
    %c0_13 = arith.constant 0 : index
    %c0_14 = arith.constant 0 : index
    %14 = vector.load %arg2[%c0_11, %c1_12, %c0_13, %c0_14] : memref<1x2x128x256xf32, #tpu.memory_space<vmem>>, vector<1x1x128x256xf32>
    %15 = vector.shape_cast %14 : vector<1x1x128x256xf32> to vector<128x256xf32>
    %cst_15 = arith.constant dense<0.000000e+00> : vector<96x256xf32>
    %16 = tpu.matmul %13, %15, %cst_15 {dimension_numbers = #tpu.dot_dimension_numbers<[1], [0], [0], [1], [0, 0, 1, 1], [], []>} : vector<96x128xf32>, vector<128x256xf32>, vector<96x256xf32> -> vector<96x256xf32>
    %cst_16 = arith.constant 0.000000e+00 : f32
    %17 = vector.broadcast %cst_16 : f32 to vector<96x256xf32>
    %18 = arith.cmpf ogt, %16, %17 : vector<96x256xf32>
    %cst_17 = arith.constant 2.000000e-01 : f32
    %19 = vector.broadcast %cst_17 : f32 to vector<96x256xf32>
    %20 = arith.mulf %19, %16 : vector<96x256xf32>
    %21 = arith.select %18, %16, %20 : vector<96x256xi1>, vector<96x256xf32>
    %22 = arith.addf %11, %21 : vector<96x256xf32>
    %23 = vector.shape_cast %22 : vector<96x256xf32> to vector<1x96x256xf32>
    %c0_18 = arith.constant 0 : index
    %c0_19 = arith.constant 0 : index
    %c0_20 = arith.constant 0 : index
    %24 = vector.load %arg4[%c0_18, %c0_19, %c0_20] : memref<1x96x256xf32, #tpu.memory_space<vmem>>, vector<1x96x256xf32>
    tpu.vector_store %arg4[%c0_18, %c0_19, %c0_20], %23 {strides = array<i32>} : memref<1x96x256xf32, #tpu.memory_space<vmem>>, vector<1x96x256xf32>,
    return
  }
  func.func @transform_0(%arg0: i32, %arg1: i32) -> (i32, i32, i32, i32) {
    %c0_i32 = arith.constant 0 : i32
    %c0_i32_0 = arith.constant 0 : i32
    %c0_i32_1 = arith.constant 0 : i32
    return %arg0, %c0_i32, %c0_i32_0, %arg1 : i32, i32, i32, i32
  }
  func.func @transform_1(%arg0: i32, %arg1: i32) -> (i32, i32, i32) {
    %c0_i32 = arith.constant 0 : i32
    %c0_i32_0 = arith.constant 0 : i32
    %c0_i32_1 = arith.constant 0 : i32
    %c0_i32_2 = arith.constant 0 : i32
    return %c0_i32, %c0_i32_0, %c0_i32_1 : i32, i32, i32
  }
  func.func @transform_2(%arg0: i32, %arg1: i32) -> (i32, i32, i32) {
    %c0_i32 = arith.constant 0 : i32
    %c0_i32_0 = arith.constant 0 : i32
    return %arg0, %c0_i32, %arg1 : i32, i32, i32
  }
}

</mosaic_0001>

<bundles_post_ra>
// kernel: tpu_custom_call.1
= control target key start
LH: loop header
LB: loop body
LE: loop exit
PB: predicated region body
PF: predicated region fallthrough
CT: control target
= control target key end

     0   :  { %7 = vsyncpa [#allocation3], 0  ;;  %s1591_s0 = inlined_call_operand.hbm [shape: f32[2,2,128,256], index: 0, kind: input, shape index: {}]   ;;  %s1592_s1 = inlined_call_operand.hbm [shape: f32[2,96,128], index: 1, kind: input, shape index: {}]   ;;  %s1593_s2 = inlined_call_operand.hbm [shape: f32[2,96,256], index: 2, kind: output, shape index: {}]  }
   0x1   :  { %9 = vsyncpa [#allocation3 + $0x1], 0 }
   0x2   :  { %10 = vsyncpa [#allocation6], 0 }
   0x3   :  { %11 = vsyncpa [#allocation4], 0 }
   0x4   :  { %13 = vsyncpa [#allocation4 + $0x1], 0  ;;  %s1254_s9 = smov 0   ;;  %s1256_s10 = smov 0  }
   0x5   :  { %s1258_s11 = smov 0   ;;  %s1260_s12 = smov 0  }
   0x6   :  { %s1262_s13 = smov 0   ;;  %s1264_s14 = smov 0  }
   0x7 LB: > { %s890_s15 = sadd.s32 4294967295, %s1227_s14   ;;  %s891_s16 = sadd.s32 4294967294, %s1227_s14   ;;  %s1227_s14 = sphi %s1264_s14, %s19_s14   ;;  %s1223_s13 = sphi %s1262_s13, %s1617_s13   ;;  %s1219_s12 = sphi %s1260_s12, %s1616_s12   ;;  %s1215_s11 = sphi %s1258_s11, %s1615_s11   ;;  %s1211_s10 = sphi %s1256_s10, %s1614_s10   ;;  %s1207_s9 = sphi %s1254_s9, %s1613_s9  }
   0x8   : > { %p53_p0 = scmp.ne.s32.totalorder %s1211_s10, %s1207_s9  ;;  %p1288_p1 = scmp.eq.s32.totalorder %s890_s15, 0 }
   0x9   : > { %p1292_p2 = scmp.eq.s32.totalorder %s890_s15, 1  ;;  %p106_p3 = scmp.eq.s32.totalorder %s891_s16, 1 }
   0xa   : > { %s1598_s17 = scalar_select %p1288_p1, 1, 0 }
   0xb   : > { %s1599_s18 = scalar_select %p1292_p2, 1, 0 }
   0xc   : > { %p1298_p4 = por %p1288_p1, %p53_p0  ;;  %p892_p5 = scmp.ge.s32.totalorder %s1227_s14, 1 }
   0xd   : > { %p1303_p6 = por %p106_p3, %p53_p0  ;;  %p113_p7 = scmp.lt.s32.totalorder %s1227_s14, 3 }
   0xe   : > { %s1600_s19 = scalar_select %p1298_p4, 1, 0 }
   0xf   : > { %s1601_s20 = scalar_select %p1303_p6, 1, 0 }
  0x10   : > { %p1308_p8 = pnand %p892_p5, %p113_p7  ;;  %s1229_s22 = smov [#allocation5]  }
  0x11   : > { %s125_s23 = sshll.u32 %s1229_s22, 4  ;;  %s31_s25 = sadd.s32 1, %s1223_s13  ;;  %s126_s23 = int_to_ptr.vmem [resolvable:$true] %s125_s23 }
  0x12   : > { %s1602_s21 = scalar_select %p1308_p8, 1, 0 }
  0x13   : > { %p1011_p9 = pneg %p1308_p8  ;;  %s1083_s28 = scalar_lea.hbm %s1592_s1, 3072 }
  0x14   : > { %p1084_p12 = scmp.ne.s32.totalorder %s1592_s1, %s1083_s28  ;;  %p1090_p5 = scmp.lt.u32.totalorder %s1083_s28, %s1592_s1 }
  0x15   : > { %p1317_p11 = pnand %p1011_p9, %p1288_p1 }
  0x17   : > { %p1085_p13 = pneg %p1317_p11 }
  0x19   : > { %p1086_p0 = pnand %p1085_p13, %p1084_p12 }
  0x1b   : > { %p1087_p3 = pneg %p1086_p0 }
  0x1d   : > { %p1092_p7 = pnand %p1090_p5, %p1087_p3 }
  0x1f   : > { %1095 = shalt.err (!%p1092_p7)
}
  0x20   : > { %s1096_s5 = scalar_lea.vmem %s126_s23, 3072  ;;  %p1104_p1 = scmp.lt.s32.totalorder %s126_s23, %s126_s23 }
  0x21   : > { %p1097_p9 = scmp.ne.s32.totalorder %s126_s23, %s1096_s5  ;;  %p1105_p4 = scmp.lt.s32.totalorder %s1096_s5, %s1096_s5 }
  0x23   : > { %p1099_p10 = pnand %p1097_p9, %p1085_p13  ;;  %p1106_p8 = por %p1105_p4, %p1104_p1 }
  0x25   : > { %p1100_p6 = pneg %p1099_p10 }
  0x27   : > { %p1107_p2 = pnand %p1106_p8, %p1100_p6 }
  0x29   : > { %1110 = shalt.err (!%p1107_p2)
}
  0x2a   : > { %s1230_s6 = smov 128   ;;  %s1231_s7 = smov 8  }
  0x2b   : > { %1014 = dma.hbm_to_vmem [thread:$0]  (!%p1317_p11), %s1592_s1, 3072, %s126_s23, [#allocation6], %s1230_s6, %s1230_s6, %s1231_s7  }
  0x2c   : > { %p33_p1 = scmp.ge.s32.totalorder %s31_s25, 2  ;;  %s40_s16 = sadd.s32 1, %s1215_s11 }
  0x2d   : > { %p47_p2 = scmp.ne.s32.totalorder %s1215_s11, %s1211_s10  ;;  %p48_p4 = scmp.eq.s32.totalorder %s1227_s14, 0 }
  0x2e   : > { %s1619_s25 = smov (%p33_p1, %s31_s25), 0  ;;  %p1605_p8 = scmp.ne.s32.totalorder %s1599_s18, 0 }
  0x2f   : > { %p1344_p6 = por %p48_p4, %p47_p2  ;;  %s35_s24 = ssub.s32 %s1223_s13, %s1619_s25 }
  0x30   : > { %p1350_p10 = por %p1605_p8, %p47_p2  ;;  %p1024_p12 = scmp.lt.s32.totalorder %s1227_s14, 2 }
  0x31   : > { %p38_p11 = scmp.eq.s32.totalorder %s35_s24, 0  ;;  %s139_s23 = sand.u32 1, %s1215_s11  }
  0x32   : > { %s895_s27 = sshll.u32 %s139_s23, 9  ;;  %s936_s29 = sshll.u32 %s1223_s13, 13 }
  0x33   : > { %s1359_s28 = scalar_select %p38_p11, %s1215_s11, %s40_s16  }
  0x34   : > { %s1365_s4 = scalar_lea.hbm %s1591_s0, %s936_s29  ;;  %s143_s18 = scalar_lea.vmem [#allocation2], %s895_s27 }
  0x35   : > { %s152_s5 = sshll.u32 %s143_s18, 4  ;;  %p1371_p13 = pnand %p1024_p12, %p1344_p6  ;;  %s1367_s5 = int_to_ptr.vmem [resolvable:$true] %s152_s5 }
  0x36   : > { %s1375_s7 = scalar_lea.sflag [#allocation3], %s139_s23  ;;  %s1111_s8 = scalar_lea.hbm %s1365_s4, 8192 }
  0x37   : > { %p1112_p0 = scmp.ne.s32.totalorder %s1365_s4, %s1111_s8  ;;  %p1113_p3 = pneg %p1371_p13 }
  0x38   : > { %s1116_s22 = scalar_lea.hbm %s1591_s0, 16384  ;;  %p1117_p9 = scmp.lt.u32.totalorder %s1365_s4, %s1591_s0 }
  0x39   : > { %p1114_p5 = pnand %p1113_p3, %p1112_p0  ;;  %p1118_p1 = scmp.lt.u32.totalorder %s1116_s22, %s1111_s8 }
  0x3a   : > { %p1120_p4 = scmp.lt.u32.totalorder %s1111_s8, %s1365_s4 }
  0x3b   : > { %p1115_p7 = pneg %p1114_p5  ;;  %p1119_p2 = por %p1118_p1, %p1117_p9 }
  0x3d   : > { %p1121_p6 = por %p1120_p4, %p1119_p2 }
  0x3f   : > { %p1122_p8 = pnand %p1121_p6, %p1115_p7 }
  0x41   : > { %1125 = shalt.err (!%p1122_p8)
}
  0x42   : > { %s1126_s23 = scalar_lea.vmem %s1367_s5, 8192  ;;  %s1232_s29 = smov [#allocation2]  }
  0x43   : > { %p1127_p12 = scmp.ne.s32.totalorder %s1367_s5, %s1126_s23  ;;  %s1131_s30 = sshll.u32 %s1232_s29, 4  ;;  %s1132_s30 = int_to_ptr.vmem [resolvable:$false] %s1131_s30 }
  0x44   : > { %s1133_s3 = scalar_lea.vmem %s1132_s30, 16384  ;;  %p1134_p5 = scmp.lt.s32.totalorder %s1367_s5, %s1132_s30 }
  0x45   : > { %p1129_p11 = pnand %p1127_p12, %p1113_p3  ;;  %p1135_p9 = scmp.lt.s32.totalorder %s1133_s3, %s1126_s23 }
  0x47   : > { %p1130_p0 = pneg %p1129_p11  ;;  %p1136_p1 = por %p1135_p9, %p1134_p5 }
  0x49   : > { %p1137_p2 = pnand %p1136_p1, %p1130_p0 }
  0x4b   : > { %1140 = shalt.err (!%p1137_p2)
}
  0x4c   : > { %s1233_s18 = smov 256   ;;  %s1234_s8 = smov 16  }
  0x4d   : > { %1018 = dma.hbm_to_vmem [thread:$0]  (!%p1371_p13), %s1365_s4, 8192, %s1367_s5, %s1375_s7, %s1233_s18, %s1233_s18, %s1234_s8  }
  0x4e   : > { %p1608_p3 = scmp.ne.s32.totalorder %s1602_s21, 0 }
  0x4f   : > { %s1406_s15 = sand.u32 (!%p1608_p3), 1, %s1211_s10   ;;  %p1609_p7 = scmp.ne.s32.totalorder (!%p1608_p3), %s1600_s19, 0 }
  0x50   : > { %164 = sbr.rel (%p1608_p3) target bundleno = 406 (0x196), region = 28  ;;  %s899_s16 = sshll.u32 (!%p1608_p3), %s1406_s15, 9 }
  0x51   : > { %s167_s22 = scalar_lea.sflag (!%p1608_p3), [#allocation3], %s1406_s15  ;;  %s1410_s24 = scalar_lea.vmem (!%p1608_p3), [#allocation2], %s899_s16 }
  0x57   : > { %1194 = dma.done.wait (%p1609_p7), %s167_s22, 8192  }
  0x58   : > { %1196 = vsyncadd (%p1609_p7), %s167_s22, 4294959104  ;;  %p1610_p13 = scmp.ne.s32.totalorder %s1598_s17, 0 }
  0x5a   : > { %1198 = dma.done.wait (%p1610_p13), [#allocation6], 3072  }
  0x5b   : > { %1200 = vsyncadd (%p1610_p13), [#allocation6], 4294964224  ;;  %v1235_v0 = vmov 0.0   ;;  %v210_v1 = vld [vmem:[%s1410_s24 + $0x8] sm:$0xff]  ;;  %v212_v2 = vld [vmem:[%s1410_s24 + $0x18] sm:$0xff]  ;;  %s1001_s17 = smul.u32 192, %s1406_s15 }
  0x5c   : > { %305 = vmatprep.mubr.f32.mxu0 %v1235_v0  ;;  %584 = vmatprep.mubr.f32.mxu1 %v1235_v0  ;;  %v902_v3 = vld [vmem:[%s1410_s24 + $0x108] sm:$0xff]  ;;  %v937_v4 = vpack.c.bf16 %v212_v2, %v210_v1  ;;  %v904_v5 = vld [vmem:[%s1410_s24 + $0x118] sm:$0xff]  ;;  %v209_v6 = vld [vmem:[%s1410_s24] sm:$0xff]  ;;  %s1002_s21 = smul.u32 3072, %s1219_s12  ;;  %s778_s12 = scalar_lea.sflag [#allocation4], %s1406_s15 }
  0x5d   : > { %v211_v7 = vld [vmem:[%s1410_s24 + $0x10] sm:$0xff]  ;;  %v969_v8 = vpack.c.bf16 %v904_v5, %v902_v3  ;;  %v901_v10 = vld [vmem:[%s1410_s24 + $0x100] sm:$0xff]  ;;  %v214_v12 = vld [vmem:[%s1410_s24 + $0x28] sm:$0xff]  ;;  %s1509_s19 = scalar_lea.vmem [#allocation7], %s1001_s17  ;;  %s1236_s23 = smov [#allocation7]  }
  0x5e   : > { %v939_v9 = vpack.c.bf16 %v211_v7, %v209_v6  ;;  %v903_v11 = vld [vmem:[%s1410_s24 + $0x110] sm:$0xff]  ;;  %938 = vmatprep.subr.bf16.mxu0 %v937_v4  ;;  %v216_v14 = vld [vmem:[%s1410_s24 + $0x38] sm:$0xff]  ;;  %v906_v15 = vld [vmem:[%s1410_s24 + $0x128] sm:$0xff]  ;;  %s793_s4 = sshll.u32 %s1509_s19, 4  ;;  %s1538_s7 = scalar_lea.hbm %s1593_s2, %s1002_s21  ;;  %s1540_s4 = int_to_ptr.vmem [resolvable:$true] %s793_s4 }
  0x5f   : > { %v971_v13 = vpack.c.bf16 %v903_v11, %v901_v10  ;;  %v908_v16 = vld [vmem:[%s1410_s24 + $0x138] sm:$0xff]  ;;  %970 = vmatprep.subr.bf16.mxu1 %v969_v8  ;;  %v941_v17 = vpack.c.bf16 %v216_v14, %v214_v12  ;;  %v213_v19 = vld [vmem:[%s1410_s24 + $0x20] sm:$0xff]  ;;  %v215_v20 = vld [vmem:[%s1410_s24 + $0x30] sm:$0xff]  ;;  %s1141_s27 = scalar_lea.vmem %s1540_s4, 3072  ;;  %s1145_s29 = sshll.u32 %s1236_s23, 4  ;;  %s1146_s29 = int_to_ptr.vmem [resolvable:$false] %s1145_s29 }
  0x60   : > { %940 = vmatpush1.bf16.msra.mxu0 %v939_v9  ;;  %v973_v18 = vpack.c.bf16 %v908_v16, %v906_v15  ;;  %v905_v21 = vld [vmem:[%s1410_s24 + $0x120] sm:$0xff]  ;;  %v943_v22 = vpack.c.bf16 %v215_v20, %v213_v19  ;;  %v907_v23 = vld [vmem:[%s1410_s24 + $0x130] sm:$0xff]  ;;  %v218_v24 = vld [vmem:[%s1410_s24 + $0x48] sm:$0xff]  ;;  %p1142_p4 = scmp.ne.s32.totalorder %s1540_s4, %s1141_s27  ;;  %s1147_s30 = scalar_lea.vmem %s1146_s29, 6144 }
  0x61   : > { %972 = vmatpush1.bf16.msra.mxu1 %v971_v13  ;;  %v220_v25 = vld [vmem:[%s1410_s24 + $0x58] sm:$0xff]  ;;  %942 = vmatprep.subr.bf16.mxu0 %v941_v17  ;;  %v975_v26 = vpack.c.bf16 %v907_v23, %v905_v21  ;;  %v910_v28 = vld [vmem:[%s1410_s24 + $0x148] sm:$0xff]  ;;  %v217_v30 = vld [vmem:[%s1410_s24 + $0x40] sm:$0xff]  ;;  %p1148_p12 = scmp.lt.s32.totalorder %s1540_s4, %s1146_s29  ;;  %p1149_p11 = scmp.lt.s32.totalorder %s1147_s30, %s1141_s27 }
  0x62   : > { %974 = vmatprep.subr.bf16.mxu1 %v973_v18  ;;  %v945_v27 = vpack.c.bf16 %v220_v25, %v218_v24  ;;  %v912_v29 = vld [vmem:[%s1410_s24 + $0x158] sm:$0xff]  ;;  %v219_v32 = vld [vmem:[%s1410_s24 + $0x50] sm:$0xff]  ;;  %v909_v33 = vld [vmem:[%s1410_s24 + $0x140] sm:$0xff]  ;;  %p1143_p6 = pnand %p1142_p4, %p1350_p10 }
  0x63   : > { %v977_v31 = vpack.c.bf16 %v912_v29, %v910_v28  ;;  %v911_v34 = vld [vmem:[%s1410_s24 + $0x150] sm:$0xff]  ;;  %v947_v35 = vpack.c.bf16 %v219_v32, %v217_v30  ;;  %v222_v36 = vld [vmem:[%s1410_s24 + $0x68] sm:$0xff]  ;;  %v224_v37 = vld [vmem:[%s1410_s24 + $0x78] sm:$0xff]  ;;  %p1150_p0 = por %p1149_p11, %p1148_p12 }
  0x64   : > { %944 = vmatpush1.bf16.msra.mxu0 %v943_v22  ;;  %v914_v38 = vld [vmem:[%s1410_s24 + $0x168] sm:$0xff]  ;;  %v979_v39 = vpack.c.bf16 %v911_v34, %v909_v33  ;;  %v949_v40 = vpack.c.bf16 %v224_v37, %v222_v36  ;;  %v916_v41 = vld [vmem:[%s1410_s24 + $0x178] sm:$0xff]  ;;  %v221_v42 = vld [vmem:[%s1410_s24 + $0x60] sm:$0xff]  ;;  %p1144_p8 = pneg %p1143_p6 }
  0x65   : > { %976 = vmatpush1.bf16.msra.mxu1 %v975_v26  ;;  %946 = vmatprep.subr.bf16.mxu0 %v945_v27  ;;  %v223_v43 = vld [vmem:[%s1410_s24 + $0x70] sm:$0xff]  ;;  %v981_v44 = vpack.c.bf16 %v916_v41, %v914_v38  ;;  %v913_v45 = vld [vmem:[%s1410_s24 + $0x160] sm:$0xff]  ;;  %v226_v47 = vld [vmem:[%s1410_s24 + $0x88] sm:$0xff] }
  0x66   : > { %978 = vmatprep.subr.bf16.mxu1 %v977_v31  ;;  %v915_v46 = vld [vmem:[%s1410_s24 + $0x170] sm:$0xff]  ;;  %v228_v48 = vld [vmem:[%s1410_s24 + $0x98] sm:$0xff]  ;;  %v918_v49 = vld [vmem:[%s1410_s24 + $0x188] sm:$0xff]  ;;  %v951_v51 = vpack.c.bf16 %v223_v43, %v221_v42  ;;  %p1151_p5 = pnand %p1150_p0, %p1144_p8 }
  0x67   : > { %v920_v50 = vld [vmem:[%s1410_s24 + $0x198] sm:$0xff]  ;;  %v983_v52 = vpack.c.bf16 %v915_v46, %v913_v45  ;;  %v953_v53 = vpack.c.bf16 %v228_v48, %v226_v47  ;;  %v225_v54 = vld [vmem:[%s1410_s24 + $0x80] sm:$0xff]  ;;  %v227_v55 = vld [vmem:[%s1410_s24 + $0x90] sm:$0xff] }
  0x68   : > { %948 = vmatpush1.bf16.msra.mxu0 %v947_v35  ;;  %v917_v56 = vld [vmem:[%s1410_s24 + $0x180] sm:$0xff]  ;;  %v985_v57 = vpack.c.bf16 %v920_v50, %v918_v49  ;;  %v919_v58 = vld [vmem:[%s1410_s24 + $0x190] sm:$0xff]  ;;  %v230_v59 = vld [vmem:[%s1410_s24 + $0xa8] sm:$0xff]  ;;  %v955_v63 = vpack.c.bf16 %v227_v55, %v225_v54 }
  0x69   : > { %980 = vmatpush1.bf16.msra.mxu1 %v979_v39  ;;  %950 = vmatprep.subr.bf16.mxu0 %v949_v40  ;;  %v232_v60 = vld [vmem:[%s1410_s24 + $0xb8] sm:$0xff]  ;;  %v922_v61 = vld [vmem:[%s1410_s24 + $0x1a8] sm:$0xff]  ;;  %v987_v1 = vpack.c.bf16 %v919_v58, %v917_v56  ;;  %v229_v3 = vld [vmem:[%s1410_s24 + $0xa0] sm:$0xff] }
  0x6a   : > { %982 = vmatprep.subr.bf16.mxu1 %v981_v44  ;;  %v924_v62 = vld [vmem:[%s1410_s24 + $0x1b8] sm:$0xff]  ;;  %v957_v2 = vpack.c.bf16 %v232_v60, %v230_v59  ;;  %v231_v4 = vld [vmem:[%s1410_s24 + $0xb0] sm:$0xff]  ;;  %v921_v5 = vld [vmem:[%s1410_s24 + $0x1a0] sm:$0xff] }
  0x6b   : > { %v989_v6 = vpack.c.bf16 %v924_v62, %v922_v61  ;;  %v923_v7 = vld [vmem:[%s1410_s24 + $0x1b0] sm:$0xff]  ;;  %v234_v8 = vld [vmem:[%s1410_s24 + $0xc8] sm:$0xff]  ;;  %v236_v9 = vld [vmem:[%s1410_s24 + $0xd8] sm:$0xff]  ;;  %v959_v12 = vpack.c.bf16 %v231_v4, %v229_v3 }
  0x6c   : > { %952 = vmatpush1.bf16.msra.mxu0 %v951_v51  ;;  %v926_v10 = vld [vmem:[%s1410_s24 + $0x1c8] sm:$0xff]  ;;  %v928_v11 = vld [vmem:[%s1410_s24 + $0x1d8] sm:$0xff]  ;;  %v991_v13 = vpack.c.bf16 %v923_v7, %v921_v5  ;;  %v961_v14 = vpack.c.bf16 %v236_v9, %v234_v8  ;;  %v233_v15 = vld [vmem:[%s1410_s24 + $0xc0] sm:$0xff] }
  0x6d   : > { %984 = vmatpush1.bf16.msra.mxu1 %v983_v52  ;;  %954 = vmatprep.subr.bf16.mxu0 %v953_v53  ;;  %v235_v16 = vld [vmem:[%s1410_s24 + $0xd0] sm:$0xff]  ;;  %v925_v17 = vld [vmem:[%s1410_s24 + $0x1c0] sm:$0xff]  ;;  %v993_v18 = vpack.c.bf16 %v928_v11, %v926_v10  ;;  %v238_v20 = vld [vmem:[%s1410_s24 + $0xe8] sm:$0xff] }
  0x6e   : > { %986 = vmatprep.subr.bf16.mxu1 %v985_v57  ;;  %v927_v19 = vld [vmem:[%s1410_s24 + $0x1d0] sm:$0xff]  ;;  %v240_v21 = vld [vmem:[%s1410_s24 + $0xf8] sm:$0xff]  ;;  %v930_v22 = vld [vmem:[%s1410_s24 + $0x1e8] sm:$0xff]  ;;  %v963_v24 = vpack.c.bf16 %v235_v16, %v233_v15 }
  0x6f   : > { %v932_v23 = vld [vmem:[%s1410_s24 + $0x1f8] sm:$0xff]  ;;  %v995_v25 = vpack.c.bf16 %v927_v19, %v925_v17  ;;  %v965_v26 = vpack.c.bf16 %v240_v21, %v238_v20  ;;  %v237_v27 = vld [vmem:[%s1410_s24 + $0xe0] sm:$0xff]  ;;  %v239_v28 = vld [vmem:[%s1410_s24 + $0xf0] sm:$0xff] }
  0x70   : > { %956 = vmatpush1.bf16.msra.mxu0 %v955_v63  ;;  %v997_v29 = vpack.c.bf16 %v932_v23, %v930_v22  ;;  %v929_v30 = vld [vmem:[%s1410_s24 + $0x1e0] sm:$0xff]  ;;  %v931_v31 = vld [vmem:[%s1410_s24 + $0x1f0] sm:$0xff]  ;;  %v967_v32 = vpack.c.bf16 %v239_v28, %v237_v27  ;;  %v198_v36 = vld [vmem:[#allocation5 + $0x8] sm:$0xff] }
  0x71   : > { %988 = vmatpush1.bf16.msra.mxu1 %v987_v1  ;;  %958 = vmatprep.subr.bf16.mxu0 %v957_v2  ;;  %v999_v33 = vpack.c.bf16 %v931_v31, %v929_v30  ;;  %v197_v34 = vld [vmem:[#allocation5] sm:$0xff]  ;;  %v476_v37 = vld [vmem:[#allocation5 + $0x68] sm:$0xff]  ;;  %v199_v38 = vld [vmem:[#allocation5 + $0x10] sm:$0xff] }
  0x72   : > { %990 = vmatprep.subr.bf16.mxu1 %v989_v6  ;;  %v475_v35 = vld [vmem:[#allocation5 + $0x60] sm:$0xff]  ;;  %v477_v39 = vld [vmem:[#allocation5 + $0x70] sm:$0xff]  ;;  %v200_v40 = vld [vmem:[#allocation5 + $0x18] sm:$0xff] }
  0x73   : > { %v478_v41 = vld [vmem:[#allocation5 + $0x78] sm:$0xff]  ;;  %v201_v42 = vld [vmem:[#allocation5 + $0x20] sm:$0xff]  ;;  %v202_v44 = vld [vmem:[#allocation5 + $0x28] sm:$0xff] }
  0x74   : > { %960 = vmatpush1.bf16.msra.mxu0 %v959_v12  ;;  %v479_v43 = vld [vmem:[#allocation5 + $0x80] sm:$0xff]  ;;  %v480_v45 = vld [vmem:[#allocation5 + $0x88] sm:$0xff]  ;;  %v203_v46 = vld [vmem:[#allocation5 + $0x30] sm:$0xff] }
  0x75   : > { %992 = vmatpush1.bf16.msra.mxu1 %v991_v13  ;;  %962 = vmatprep.subr.bf16.mxu0 %v961_v14  ;;  %v481_v47 = vld [vmem:[#allocation5 + $0x90] sm:$0xff]  ;;  %v204_v48 = vld [vmem:[#allocation5 + $0x38] sm:$0xff]  ;;  %v205_v50 = vld [vmem:[#allocation5 + $0x40] sm:$0xff] }
  0x76   : > { %994 = vmatprep.subr.bf16.mxu1 %v993_v18  ;;  %v482_v49 = vld [vmem:[#allocation5 + $0x98] sm:$0xff]  ;;  %v483_v51 = vld [vmem:[#allocation5 + $0xa0] sm:$0xff]  ;;  %v206_v52 = vld [vmem:[#allocation5 + $0x48] sm:$0xff] }
  0x77   : > { %v484_v53 = vld [vmem:[#allocation5 + $0xa8] sm:$0xff]  ;;  %v207_v54 = vld [vmem:[#allocation5 + $0x50] sm:$0xff]  ;;  %v208_v56 = vld [vmem:[#allocation5 + $0x58] sm:$0xff] }
  0x78   : > { %964 = vmatpush1.bf16.msra.mxu0 %v963_v24  ;;  %v485_v55 = vld [vmem:[#allocation5 + $0xb0] sm:$0xff]  ;;  %v486_v57 = vld [vmem:[#allocation5 + $0xb8] sm:$0xff] }
  0x79   : > { %996 = vmatpush1.bf16.msra.mxu1 %v995_v25  ;;  %966 = vmatprep.subr.bf16.mxu0 %v965_v26 }
  0x7a   : > { %998 = vmatprep.subr.bf16.mxu1 %v997_v29 }
  0x7c   : > { %968 = vmatpush1.bf16.msra.mxu0 %v967_v32 }
  0x7d   : > { %1000 = vmatpush1.bf16.msra.mxu1 %v999_v33 }
  0x7f   : > { %306 = vmatmul.mubr.f32.vlgmr.msra.gmra.mrb[0].mxu0 %v197_v34 }
  0x80   : > { %585 = vmatmul.mubr.f32.vlgmr.msra.gmra.mrb[0].mxu1 %v475_v35  ;;  %311 = vmatprep.mubr.f32.mxu0 %v1235_v0 }
  0x81   : > { %590 = vmatprep.mubr.f32.mxu1 %v1235_v0 }
  0x83   : > { %312 = vmatmul.mubr.f32.gmra.mrb[2].mxu0 %v198_v36 }
  0x84   : > { %591 = vmatmul.mubr.f32.gmra.mrb[2].mxu1 %v476_v37  ;;  %317 = vmatprep.mubr.f32.mxu0 %v1235_v0 }
  0x85   : > { %596 = vmatprep.mubr.f32.mxu1 %v1235_v0 }
  0x87   : > { %318 = vmatmul.mubr.f32.gmra.mrb[4].mxu0 %v199_v38 }
  0x88   : > { %597 = vmatmul.mubr.f32.gmra.mrb[4].mxu1 %v477_v39  ;;  %323 = vmatprep.mubr.f32.mxu0 %v1235_v0 }
  0x89   : > { %602 = vmatprep.mubr.f32.mxu1 %v1235_v0 }
  0x8b   : > { %324 = vmatmul.mubr.f32.gmra.mrb[6].mxu0 %v200_v40 }
  0x8c   : > { %603 = vmatmul.mubr.f32.gmra.mrb[6].mxu1 %v478_v41  ;;  %329 = vmatprep.mubr.f32.mxu0 %v1235_v0 }
  0x8d   : > { %608 = vmatprep.mubr.f32.mxu1 %v1235_v0 }
  0x8f   : > { %330 = vmatmul.mubr.f32.gmra.mrb[8].mxu0 %v201_v42 }
  0x90   : > { %609 = vmatmul.mubr.f32.gmra.mrb[8].mxu1 %v479_v43  ;;  %335 = vmatprep.mubr.f32.mxu0 %v1235_v0 }
  0x91   : > { %614 = vmatprep.mubr.f32.mxu1 %v1235_v0 }
  0x93   : > { %336 = vmatmul.mubr.f32.gmra.mrb[10].mxu0 %v202_v44 }
  0x94   : > { %615 = vmatmul.mubr.f32.gmra.mrb[10].mxu1 %v480_v45  ;;  %341 = vmatprep.mubr.f32.mxu0 %v1235_v0 }
  0x95   : > { %620 = vmatprep.mubr.f32.mxu1 %v1235_v0 }
  0x97   : > { %342 = vmatmul.mubr.f32.gmra.mrb[12].mxu0 %v203_v46 }
  0x98   : > { %621 = vmatmul.mubr.f32.gmra.mrb[12].mxu1 %v481_v47  ;;  %347 = vmatprep.mubr.f32.mxu0 %v1235_v0 }
  0x99   : > { %626 = vmatprep.mubr.f32.mxu1 %v1235_v0 }
  0x9b   : > { %348 = vmatmul.mubr.f32.gmra.mrb[14].mxu0 %v204_v48 }
  0x9c   : > { %627 = vmatmul.mubr.f32.gmra.mrb[14].mxu1 %v482_v49  ;;  %353 = vmatprep.mubr.f32.mxu0 %v1235_v0 }
  0x9d   : > { %632 = vmatprep.mubr.f32.mxu1 %v1235_v0 }
  0x9f   : > { %354 = vmatmul.mubr.f32.gmra.mrb[16].mxu0 %v205_v50 }
  0xa0   : > { %633 = vmatmul.mubr.f32.gmra.mrb[16].mxu1 %v483_v51  ;;  %359 = vmatprep.mubr.f32.mxu0 %v1235_v0 }
  0xa1   : > { %638 = vmatprep.mubr.f32.mxu1 %v1235_v0 }
  0xa3   : > { %360 = vmatmul.mubr.f32.gmra.mrb[18].mxu0 %v206_v52 }
  0xa4   : > { %639 = vmatmul.mubr.f32.gmra.mrb[18].mxu1 %v484_v53  ;;  %365 = vmatprep.mubr.f32.mxu0 %v1235_v0 }
  0xa5   : > { %644 = vmatprep.mubr.f32.mxu1 %v1235_v0 }
  0xa7   : > { %366 = vmatmul.mubr.f32.gmra.mrb[20].mxu0 %v207_v54 }
  0xa8   : > { %645 = vmatmul.mubr.f32.gmra.mrb[20].mxu1 %v485_v55  ;;  %371 = vmatprep.mubr.f32.mxu0 %v1235_v0 }
  0xa9   : > { %650 = vmatprep.mubr.f32.mxu1 %v1235_v0 }
  0xab   : > { %372 = vmatmul.mubr.f32.gmra.mrb[22].mxu0 %v208_v56 }
  0xac   : > { %651 = vmatmul.mubr.f32.gmra.mrb[22].mxu1 %v486_v57 }
 0x152   : > { %v307_v58 = vpop.f32.mrb[0].mxu0 }
 0x153   : > { %vm378_vm0 = vcmp.gt.f32.partialorder %v307_v58, 0.0  ;;  %v402_v59 = vmul.f32 0.2, %v307_v58  ;;  %v586_v60 = vpop.f32.mrb[0].mxu1  ;;  %v309_v61 = vpop.f32.mrb[1].mxu0 }
 0x154   : > { %vm657_vm1 = vcmp.gt.f32.partialorder %v586_v60, 0.0  ;;  %v681_v62 = vmul.f32 0.2, %v586_v60  ;;  %vm379_vm2 = vcmp.gt.f32.partialorder %v309_v61, 0.0  ;;  %v403_v63 = vmul.f32 0.2, %v309_v61 }
 0x155   : > { %v426_v1 = vsel %vm378_vm0, %v307_v58, %v402_v59  ;;  %v588_v2 = vpop.f32.mrb[1].mxu1 }
 0x156   : > { %v705_v3 = vsel %vm657_vm1, %v586_v60, %v681_v62  ;;  %v427_v4 = vsel %vm379_vm2, %v309_v61, %v403_v63  ;;  %vm658_vm3 = vcmp.gt.f32.partialorder %v588_v2, 0.0  ;;  %v682_v5 = vmul.f32 0.2, %v588_v2  ;;  %v313_v0 = vpop.f32.mrb[2].mxu0 }
 0x157   : > { %v729_v6 = vadd.f32 %v705_v3, %v426_v1  ;;  %vm380_vm4 = vcmp.gt.f32.partialorder %v313_v0, 0.0  ;;  %v404_v7 = vmul.f32 0.2, %v313_v0  ;;  %v592_v8 = vpop.f32.mrb[2].mxu1  ;;  %v315_v9 = vpop.f32.mrb[3].mxu0 }
 0x158   : > { %v706_v10 = vsel %vm658_vm3, %v588_v2, %v682_v5  ;;  %vm659_vm5 = vcmp.gt.f32.partialorder %v592_v8, 0.0  ;;  %v683_v11 = vmul.f32 0.2, %v592_v8  ;;  %vm381_vm6 = vcmp.gt.f32.partialorder %v315_v9, 0.0  ;;  %v594_v12 = vpop.f32.mrb[3].mxu1 }
 0x159   : > { %753 = vst [vmem:[%s1509_s19] sm:$0xff] %v729_v6  ;;  %v730_v13 = vadd.f32 %v706_v10, %v427_v4  ;;  %v428_v14 = vsel %vm380_vm4, %v313_v0, %v404_v7  ;;  %v405_v15 = vmul.f32 0.2, %v315_v9  ;;  %vm660_vm7 = vcmp.gt.f32.partialorder %v594_v12, 0.0 }
 0x15a   : > { %v707_v16 = vsel %vm659_vm5, %v592_v8, %v683_v11  ;;  %v684_v17 = vmul.f32 0.2, %v594_v12  ;;  %v319_v18 = vpop.f32.mrb[4].mxu0 }
 0x15b   : > { %754 = vst [vmem:[%s1509_s19 + $0x8] sm:$0xff] %v730_v13  ;;  %v731_v19 = vadd.f32 %v707_v16, %v428_v14  ;;  %v429_v20 = vsel %vm381_vm6, %v315_v9, %v405_v15  ;;  %vm382_vm8 = vcmp.gt.f32.partialorder %v319_v18, 0.0  ;;  %v406_v21 = vmul.f32 0.2, %v319_v18  ;;  %v598_v22 = vpop.f32.mrb[4].mxu1  ;;  %v321_v23 = vpop.f32.mrb[5].mxu0 }
 0x15c   : > { %v708_v24 = vsel %vm660_vm7, %v594_v12, %v684_v17  ;;  %vm661_vm9 = vcmp.gt.f32.partialorder %v598_v22, 0.0  ;;  %v685_v25 = vmul.f32 0.2, %v598_v22  ;;  %vm383_vm10 = vcmp.gt.f32.partialorder %v321_v23, 0.0  ;;  %v600_v26 = vpop.f32.mrb[5].mxu1 }
 0x15d   : > { %755 = vst [vmem:[%s1509_s19 + $0x10] sm:$0xff] %v731_v19  ;;  %v732_v27 = vadd.f32 %v708_v24, %v429_v20  ;;  %v430_v28 = vsel %vm382_vm8, %v319_v18, %v406_v21  ;;  %v407_v29 = vmul.f32 0.2, %v321_v23  ;;  %vm662_vm11 = vcmp.gt.f32.partialorder %v600_v26, 0.0 }
 0x15e   : > { %v709_v30 = vsel %vm661_vm9, %v598_v22, %v685_v25  ;;  %v686_v31 = vmul.f32 0.2, %v600_v26  ;;  %v325_v32 = vpop.f32.mrb[6].mxu0 }
 0x15f   : > { %756 = vst [vmem:[%s1509_s19 + $0x18] sm:$0xff] %v732_v27  ;;  %v733_v33 = vadd.f32 %v709_v30, %v430_v28  ;;  %v431_v34 = vsel %vm383_vm10, %v321_v23, %v407_v29  ;;  %vm384_vm12 = vcmp.gt.f32.partialorder %v325_v32, 0.0  ;;  %v408_v35 = vmul.f32 0.2, %v325_v32  ;;  %v604_v36 = vpop.f32.mrb[6].mxu1  ;;  %v327_v37 = vpop.f32.mrb[7].mxu0 }
 0x160   : > { %v710_v38 = vsel %vm662_vm11, %v600_v26, %v686_v31  ;;  %vm663_vm13 = vcmp.gt.f32.partialorder %v604_v36, 0.0  ;;  %v687_v39 = vmul.f32 0.2, %v604_v36  ;;  %vm385_vm14 = vcmp.gt.f32.partialorder %v327_v37, 0.0  ;;  %v606_v40 = vpop.f32.mrb[7].mxu1 }
 0x161   : > { %757 = vst [vmem:[%s1509_s19 + $0x20] sm:$0xff] %v733_v33  ;;  %v734_v41 = vadd.f32 %v710_v38, %v431_v34  ;;  %v432_v42 = vsel %vm384_vm12, %v325_v32, %v408_v35  ;;  %v409_v43 = vmul.f32 0.2, %v327_v37  ;;  %vm664_vm15 = vcmp.gt.f32.partialorder %v606_v40, 0.0 }
 0x162   : > { %v711_v44 = vsel %vm663_vm13, %v604_v36, %v687_v39  ;;  %v688_v45 = vmul.f32 0.2, %v606_v40  ;;  %v331_v46 = vpop.f32.mrb[8].mxu0 }
 0x163   : > { %758 = vst [vmem:[%s1509_s19 + $0x28] sm:$0xff] %v734_v41  ;;  %v735_v47 = vadd.f32 %v711_v44, %v432_v42  ;;  %v433_v48 = vsel %vm385_vm14, %v327_v37, %v409_v43  ;;  %vm386_vm0 = vcmp.gt.f32.partialorder %v331_v46, 0.0  ;;  %v410_v49 = vmul.f32 0.2, %v331_v46  ;;  %v610_v50 = vpop.f32.mrb[8].mxu1  ;;  %v333_v51 = vpop.f32.mrb[9].mxu0 }
 0x164   : > { %v712_v52 = vsel %vm664_vm15, %v606_v40, %v688_v45  ;;  %vm665_vm1 = vcmp.gt.f32.partialorder %v610_v50, 0.0  ;;  %v689_v53 = vmul.f32 0.2, %v610_v50  ;;  %vm387_vm2 = vcmp.gt.f32.partialorder %v333_v51, 0.0  ;;  %v612_v54 = vpop.f32.mrb[9].mxu1 }
 0x165   : > { %759 = vst [vmem:[%s1509_s19 + $0x30] sm:$0xff] %v735_v47  ;;  %v736_v55 = vadd.f32 %v712_v52, %v433_v48  ;;  %v434_v56 = vsel %vm386_vm0, %v331_v46, %v410_v49  ;;  %v411_v57 = vmul.f32 0.2, %v333_v51  ;;  %vm666_vm3 = vcmp.gt.f32.partialorder %v612_v54, 0.0 }
 0x166   : > { %v713_v58 = vsel %vm665_vm1, %v610_v50, %v689_v53  ;;  %v690_v59 = vmul.f32 0.2, %v612_v54  ;;  %v337_v60 = vpop.f32.mrb[10].mxu0 }
 0x167   : > { %760 = vst [vmem:[%s1509_s19 + $0x38] sm:$0xff] %v736_v55  ;;  %v737_v61 = vadd.f32 %v713_v58, %v434_v56  ;;  %v435_v62 = vsel %vm387_vm2, %v333_v51, %v411_v57  ;;  %vm388_vm4 = vcmp.gt.f32.partialorder %v337_v60, 0.0  ;;  %v412_v63 = vmul.f32 0.2, %v337_v60  ;;  %v616_v1 = vpop.f32.mrb[10].mxu1  ;;  %v339_v2 = vpop.f32.mrb[11].mxu0 }
 0x168   : > { %v714_v3 = vsel %vm666_vm3, %v612_v54, %v690_v59  ;;  %vm667_vm5 = vcmp.gt.f32.partialorder %v616_v1, 0.0  ;;  %v691_v4 = vmul.f32 0.2, %v616_v1  ;;  %vm389_vm6 = vcmp.gt.f32.partialorder %v339_v2, 0.0  ;;  %v618_v5 = vpop.f32.mrb[11].mxu1 }
 0x169   : > { %761 = vst [vmem:[%s1509_s19 + $0x40] sm:$0xff] %v737_v61  ;;  %v738_v0 = vadd.f32 %v714_v3, %v435_v62  ;;  %v436_v6 = vsel %vm388_vm4, %v337_v60, %v412_v63  ;;  %v413_v7 = vmul.f32 0.2, %v339_v2  ;;  %vm668_vm7 = vcmp.gt.f32.partialorder %v618_v5, 0.0 }
 0x16a   : > { %v715_v8 = vsel %vm667_vm5, %v616_v1, %v691_v4  ;;  %v692_v9 = vmul.f32 0.2, %v618_v5  ;;  %v343_v10 = vpop.f32.mrb[12].mxu0 }
 0x16b   : > { %762 = vst [vmem:[%s1509_s19 + $0x48] sm:$0xff] %v738_v0  ;;  %v739_v11 = vadd.f32 %v715_v8, %v436_v6  ;;  %v437_v12 = vsel %vm389_vm6, %v339_v2, %v413_v7  ;;  %vm390_vm8 = vcmp.gt.f32.partialorder %v343_v10, 0.0  ;;  %v414_v13 = vmul.f32 0.2, %v343_v10  ;;  %v622_v14 = vpop.f32.mrb[12].mxu1  ;;  %v345_v15 = vpop.f32.mrb[13].mxu0 }
 0x16c   : > { %v716_v16 = vsel %vm668_vm7, %v618_v5, %v692_v9  ;;  %vm669_vm9 = vcmp.gt.f32.partialorder %v622_v14, 0.0  ;;  %v693_v17 = vmul.f32 0.2, %v622_v14  ;;  %vm391_vm10 = vcmp.gt.f32.partialorder %v345_v15, 0.0  ;;  %v624_v18 = vpop.f32.mrb[13].mxu1 }
 0x16d   : > { %763 = vst [vmem:[%s1509_s19 + $0x50] sm:$0xff] %v739_v11  ;;  %v740_v19 = vadd.f32 %v716_v16, %v437_v12  ;;  %v438_v20 = vsel %vm390_vm8, %v343_v10, %v414_v13  ;;  %v415_v21 = vmul.f32 0.2, %v345_v15  ;;  %vm670_vm11 = vcmp.gt.f32.partialorder %v624_v18, 0.0 }
 0x16e   : > { %v717_v22 = vsel %vm669_vm9, %v622_v14, %v693_v17  ;;  %v694_v23 = vmul.f32 0.2, %v624_v18  ;;  %v349_v24 = vpop.f32.mrb[14].mxu0 }
 0x16f   : > { %764 = vst [vmem:[%s1509_s19 + $0x58] sm:$0xff] %v740_v19  ;;  %v741_v25 = vadd.f32 %v717_v22, %v438_v20  ;;  %v439_v26 = vsel %vm391_vm10, %v345_v15, %v415_v21  ;;  %vm392_vm12 = vcmp.gt.f32.partialorder %v349_v24, 0.0  ;;  %v416_v27 = vmul.f32 0.2, %v349_v24  ;;  %v628_v28 = vpop.f32.mrb[14].mxu1  ;;  %v351_v29 = vpop.f32.mrb[15].mxu0 }
 0x170   : > { %v718_v30 = vsel %vm670_vm11, %v624_v18, %v694_v23  ;;  %vm671_vm13 = vcmp.gt.f32.partialorder %v628_v28, 0.0  ;;  %v695_v31 = vmul.f32 0.2, %v628_v28  ;;  %vm393_vm14 = vcmp.gt.f32.partialorder %v351_v29, 0.0  ;;  %v630_v32 = vpop.f32.mrb[15].mxu1 }
 0x171   : > { %765 = vst [vmem:[%s1509_s19 + $0x60] sm:$0xff] %v741_v25  ;;  %v742_v33 = vadd.f32 %v718_v30, %v439_v26  ;;  %v440_v34 = vsel %vm392_vm12, %v349_v24, %v416_v27  ;;  %v417_v35 = vmul.f32 0.2, %v351_v29  ;;  %vm672_vm15 = vcmp.gt.f32.partialorder %v630_v32, 0.0 }
 0x172   : > { %v719_v36 = vsel %vm671_vm13, %v628_v28, %v695_v31  ;;  %v696_v37 = vmul.f32 0.2, %v630_v32  ;;  %v355_v38 = vpop.f32.mrb[16].mxu0 }
 0x173   : > { %766 = vst [vmem:[%s1509_s19 + $0x68] sm:$0xff] %v742_v33  ;;  %v743_v39 = vadd.f32 %v719_v36, %v440_v34  ;;  %v441_v40 = vsel %vm393_vm14, %v351_v29, %v417_v35  ;;  %vm394_vm0 = vcmp.gt.f32.partialorder %v355_v38, 0.0  ;;  %v418_v41 = vmul.f32 0.2, %v355_v38  ;;  %v634_v42 = vpop.f32.mrb[16].mxu1  ;;  %v357_v43 = vpop.f32.mrb[17].mxu0 }
 0x174   : > { %v720_v44 = vsel %vm672_vm15, %v630_v32, %v696_v37  ;;  %vm673_vm1 = vcmp.gt.f32.partialorder %v634_v42, 0.0  ;;  %v697_v45 = vmul.f32 0.2, %v634_v42  ;;  %vm395_vm2 = vcmp.gt.f32.partialorder %v357_v43, 0.0  ;;  %v636_v46 = vpop.f32.mrb[17].mxu1 }
 0x175   : > { %767 = vst [vmem:[%s1509_s19 + $0x70] sm:$0xff] %v743_v39  ;;  %v744_v47 = vadd.f32 %v720_v44, %v441_v40  ;;  %v442_v48 = vsel %vm394_vm0, %v355_v38, %v418_v41  ;;  %v419_v49 = vmul.f32 0.2, %v357_v43  ;;  %vm674_vm3 = vcmp.gt.f32.partialorder %v636_v46, 0.0 }
 0x176   : > { %v721_v50 = vsel %vm673_vm1, %v634_v42, %v697_v45  ;;  %v698_v51 = vmul.f32 0.2, %v636_v46  ;;  %v361_v52 = vpop.f32.mrb[18].mxu0 }
 0x177   : > { %768 = vst [vmem:[%s1509_s19 + $0x78] sm:$0xff] %v744_v47  ;;  %v745_v53 = vadd.f32 %v721_v50, %v442_v48  ;;  %v443_v54 = vsel %vm395_vm2, %v357_v43, %v419_v49  ;;  %vm396_vm4 = vcmp.gt.f32.partialorder %v361_v52, 0.0  ;;  %v420_v55 = vmul.f32 0.2, %v361_v52  ;;  %v640_v56 = vpop.f32.mrb[18].mxu1  ;;  %v363_v57 = vpop.f32.mrb[19].mxu0 }
 0x178   : > { %v722_v58 = vsel %vm674_vm3, %v636_v46, %v698_v51  ;;  %vm675_vm5 = vcmp.gt.f32.partialorder %v640_v56, 0.0  ;;  %v699_v59 = vmul.f32 0.2, %v640_v56  ;;  %vm397_vm6 = vcmp.gt.f32.partialorder %v363_v57, 0.0  ;;  %v642_v60 = vpop.f32.mrb[19].mxu1 }
 0x179   : > { %769 = vst [vmem:[%s1509_s19 + $0x80] sm:$0xff] %v745_v53  ;;  %v746_v61 = vadd.f32 %v722_v58, %v443_v54  ;;  %v444_v62 = vsel %vm396_vm4, %v361_v52, %v420_v55  ;;  %v421_v63 = vmul.f32 0.2, %v363_v57  ;;  %vm676_vm7 = vcmp.gt.f32.partialorder %v642_v60, 0.0 }
 0x17a   : > { %v723_v1 = vsel %vm675_vm5, %v640_v56, %v699_v59  ;;  %v700_v2 = vmul.f32 0.2, %v642_v60  ;;  %v367_v3 = vpop.f32.mrb[20].mxu0 }
 0x17b   : > { %770 = vst [vmem:[%s1509_s19 + $0x88] sm:$0xff] %v746_v61  ;;  %v747_v4 = vadd.f32 %v723_v1, %v444_v62  ;;  %v445_v5 = vsel %vm397_vm6, %v363_v57, %v421_v63  ;;  %vm398_vm8 = vcmp.gt.f32.partialorder %v367_v3, 0.0  ;;  %v422_v0 = vmul.f32 0.2, %v367_v3  ;;  %v646_v6 = vpop.f32.mrb[20].mxu1  ;;  %v369_v7 = vpop.f32.mrb[21].mxu0 }
 0x17c   : > { %v724_v8 = vsel %vm676_vm7, %v642_v60, %v700_v2  ;;  %vm677_vm9 = vcmp.gt.f32.partialorder %v646_v6, 0.0  ;;  %v701_v9 = vmul.f32 0.2, %v646_v6  ;;  %vm399_vm10 = vcmp.gt.f32.partialorder %v369_v7, 0.0  ;;  %v648_v10 = vpop.f32.mrb[21].mxu1 }
 0x17d   : > { %771 = vst [vmem:[%s1509_s19 + $0x90] sm:$0xff] %v747_v4  ;;  %v748_v11 = vadd.f32 %v724_v8, %v445_v5  ;;  %v446_v12 = vsel %vm398_vm8, %v367_v3, %v422_v0  ;;  %v423_v13 = vmul.f32 0.2, %v369_v7  ;;  %vm678_vm11 = vcmp.gt.f32.partialorder %v648_v10, 0.0 }
 0x17e   : > { %v725_v14 = vsel %vm677_vm9, %v646_v6, %v701_v9  ;;  %v702_v15 = vmul.f32 0.2, %v648_v10  ;;  %v373_v16 = vpop.f32.mrb[22].mxu0 }
 0x17f   : > { %772 = vst [vmem:[%s1509_s19 + $0x98] sm:$0xff] %v748_v11  ;;  %v749_v17 = vadd.f32 %v725_v14, %v446_v12  ;;  %v447_v18 = vsel %vm399_vm10, %v369_v7, %v423_v13  ;;  %vm400_vm12 = vcmp.gt.f32.partialorder %v373_v16, 0.0  ;;  %v424_v19 = vmul.f32 0.2, %v373_v16  ;;  %v652_v20 = vpop.f32.mrb[22].mxu1  ;;  %v375_v21 = vpop.f32.mrb[23].mxu0 }
 0x180   : > { %v726_v22 = vsel %vm678_vm11, %v648_v10, %v702_v15  ;;  %vm679_vm13 = vcmp.gt.f32.partialorder %v652_v20, 0.0  ;;  %v703_v23 = vmul.f32 0.2, %v652_v20  ;;  %vm401_vm14 = vcmp.gt.f32.partialorder %v375_v21, 0.0  ;;  %v654_v24 = vpop.f32.mrb[23].mxu1 }
 0x181   : > { %773 = vst [vmem:[%s1509_s19 + $0xa0] sm:$0xff] %v749_v17  ;;  %v750_v25 = vadd.f32 %v726_v22, %v447_v18  ;;  %v448_v26 = vsel %vm400_vm12, %v373_v16, %v424_v19  ;;  %v425_v27 = vmul.f32 0.2, %v375_v21  ;;  %vm680_vm15 = vcmp.gt.f32.partialorder %v654_v24, 0.0 }
 0x182   : > { %v727_v28 = vsel %vm679_vm13, %v652_v20, %v703_v23  ;;  %v704_v29 = vmul.f32 0.2, %v654_v24 }
 0x183   : > { %774 = vst [vmem:[%s1509_s19 + $0xa8] sm:$0xff] %v750_v25  ;;  %v751_v30 = vadd.f32 %v727_v28, %v448_v26  ;;  %v449_v31 = vsel %vm401_vm14, %v375_v21, %v425_v27 }
 0x184   : > { %v728_v32 = vsel %vm680_vm15, %v654_v24, %v704_v29 }
 0x185   : > { %775 = vst [vmem:[%s1509_s19 + $0xb0] sm:$0xff] %v751_v30  ;;  %v752_v33 = vadd.f32 %v728_v32, %v449_v31 }
 0x187   : > { %776 = vst [vmem:[%s1509_s19 + $0xb8] sm:$0xff] %v752_v33 }
 0x188   : > { %1154 = shalt.err (!%p1151_p5)
}
 0x189   : > { %s1155_s3 = scalar_lea.hbm %s1538_s7, 3072  ;;  %s1159_s16 = scalar_lea.hbm %s1593_s2, 6144 }
 0x18a   : > { %p1156_p9 = scmp.ne.s32.totalorder %s1538_s7, %s1155_s3  ;;  %p1160_p3 = scmp.lt.u32.totalorder %s1538_s7, %s1593_s2 }
 0x18b   : > { %p1161_p7 = scmp.lt.u32.totalorder %s1159_s16, %s1155_s3  ;;  %p1163_p4 = scmp.lt.u32.totalorder %s1155_s3, %s1538_s7 }
 0x18c   : > { %p1157_p1 = pnand %p1156_p9, %p1350_p10 }
 0x18d   : > { %p1162_p13 = por %p1161_p7, %p1160_p3 }
 0x18e   : > { %p1158_p2 = pneg %p1157_p1 }
 0x18f   : > { %p1164_p6 = por %p1163_p4, %p1162_p13 }
 0x191   : > { %p1165_p8 = pnand %p1164_p6, %p1158_p2 }
 0x193   : > { %1168 = shalt.err (!%p1165_p8)
}
 0x194   : > { %s1237_s17 = smov 256   ;;  %s1238_s19 = smov 16  }
 0x195   : > { %1009 = dma.vmem_to_hbm [thread:$0]  (%p1350_p10), %s1540_s4, 3072, %s1538_s7, %s778_s12, %s1237_s17, %s1237_s17, %s1238_s19  }
 0x196 PF: > { %s808_s21 = sand.u32 1, %s1207_s9   ;;  %p1611_p12 = scmp.ne.s32.totalorder %s1601_s20, 0 }
 0x197   : > { %p1612_p11 = scmp.ge.s32.totalorder %s1227_s14, 2  ;;  %s809_s5 = scalar_lea.sflag [#allocation4], %s808_s21 }
 0x199   : > { %p1020_p0 = pnand %p1612_p11, %p1611_p12 }
 0x19b   : > { %1202 = dma.done.wait (!%p1020_p0), %s809_s5, 3072  }
 0x19c   : > { %1204 = vsyncadd (!%p1020_p0), %s809_s5, 4294964224  ;;  %s19_s14 = sadd.s32 1, %s1227_s14   ;;  %s1613_s9 = smov %s1211_s10 }
 0x19d   : > { %p16_p5 = scmp.ge.s32.totalorder %s19_s14, 4   ;;  %s1614_s10 = smov %s1215_s11 }
 0x19e   : > { %s1615_s11 = smov %s1359_s28  ;;  %s1616_s12 = smov %s1223_s13 }
 0x19f   : > { %s1617_s13 = smov %s1619_s25  ;;  %18 = sbr.rel (!%p16_p5) target bundleno = 7 (0x7), region = 79 }
 0x1a6   :  { %814 = vsyncpa [#allocation3], 1 }
 0x1a7   :  { %816 = vsyncpa [#allocation3 + $0x1], 1 }
 0x1a8   :  { %817 = vsyncpa [#allocation6], 1 }
 0x1a9   :  { %818 = vsyncpa [#allocation4], 1 }
 0x1aa   :  { %820 = vsyncpa [#allocation4 + $0x1], 1 }

</bundles_post_ra>
